<compile_context>
chip_gen: v5e
topology: v5e:2x2
jax: 0.10.0
libtpu: 0.0.40
codegen_flags: <defaults>
</compile_context>

<pallas_src>
import functools
import math

import jax
import jax.numpy as jnp
from jax.experimental import pallas as pl
from jax.experimental.pallas import tpu as pltpu

NEG_INF = float(-2.0 ** 32 + 1.0)


# --------------------------------------------------------------------------
# VMEM budgeting helpers (generation-aware: v7x has 64 MiB, v5e/v6e 128 MiB)
# --------------------------------------------------------------------------
def _pick_vmem_limit():
    try:
        cap = pltpu.get_tpu_info().vmem_capacity_bytes
    except Exception:
        cap = 64 * 1024 * 1024  # conservative fallback
    return int(min(cap * 0.7, 100 * 1024 * 1024))


def _choose_q_tile(L, H, rel_itemsize, vmem_limit, batch):
    """Largest query tile whose working set fits comfortably in VMEM.

    Per query-row VMEM cost (leaner model after dropping tdk/tdv materialization):
      4 relation inputs x 2 pipeline buffers : 8 * L * H * rel_itemsize
      ~4 live (tq, L, H) compute temporaries : 16 * L * H       (f32)
      lane-padded (tq, L, head_num) softmax  : ~2 * L * 512 B   (128-lane padded f32)
    """
    budget = int(vmem_limit * 0.6)
    per_row = L * H * (8 * rel_itemsize + 16) + 2 * L * 512
    cands = [t for t in range(L, 0, -1) if L % t == 0 and (t == L or t % 8 == 0)]
    fitting = [t for t in cands if t * per_row <= budget]
    if not fitting:
        return cands[-1]  # TODO(synk): support ragged query tiles for very large L*H
    # Prefer a tile that yields an even, >=2-step grid (megacore balance on v7x).
    for t in fitting:
        steps = batch * (L // t)
        if steps >= 2 and steps % 2 == 0:
            return t
    return fitting[0]


# --------------------------------------------------------------------------
# Tiled linear projection kernel:  y = x @ w + b   (w stored as (in, out))
# --------------------------------------------------------------------------
def _linear_kernel(x_ref, w_ref, b_ref, o_ref):
    x = x_ref[...].astype(jnp.float32)
    w = w_ref[...].astype(jnp.float32)
    b = b_ref[...].astype(jnp.float32)  # (1, N_out)
    o_ref[...] = (jnp.dot(x, w, preferred_element_type=jnp.float32) + b).astype(
        o_ref.dtype
    )


def pallas_linear(x, w, b, *, vmem_limit, tile_m=256):
    """x: (M, K_in), w: (K_in, N_out), b: (N_out,) -> (M, N_out) f32."""
    M, Kin = x.shape
    Nout = w.shape[1]
    tile_m = int(min(tile_m, max(8, M)))
    m_pad = pl.cdiv(M, tile_m) * tile_m
    if m_pad != M:
        x = jnp.pad(x, ((0, m_pad - M), (0, 0)))
    grid = (m_pad // tile_m,)
    y = pl.pallas_call(
        _linear_kernel,
        out_shape=jax.ShapeDtypeStruct((m_pad, Nout), jnp.float32),
        grid=grid,
        in_specs=[
            pl.BlockSpec((tile_m, Kin), lambda i: (i, 0)),
            pl.BlockSpec((Kin, Nout), lambda i: (0, 0)),
            pl.BlockSpec((1, Nout), lambda i: (0, 0)),
        ],
        out_specs=pl.BlockSpec((tile_m, Nout), lambda i: (i, 0)),
        compiler_params=pltpu.CompilerParams(
            dimension_semantics=("parallel",),
            vmem_limit_bytes=vmem_limit,
        ),
    )(x, w, b.reshape(1, Nout))
    return y[:M] if m_pad != M else y


# --------------------------------------------------------------------------
# Time-aware attention kernel.  One grid step = one (batch, query-tile) pair.
# Heads are handled with block-diagonal segment matrices on the MXU; all
# elementwise work stays lane-dense over the full H axis (no per-head slices,
# no concatenate).
# --------------------------------------------------------------------------
def _time_attn_kernel(
    q_ref, k_ref, v_ref, pk_ref, pv_ref,
    tk_ref, tv_ref, dk_ref, dv_ref,
    tmask_ref, amask_ref, o_ref,
    *, head_num, head_size, compute_dtype,
):
    f32 = jnp.float32
    cdt = compute_dtype
    H = head_num * head_size
    tq = q_ref.shape[1]
    L = k_ref.shape[1]
    inv_sqrt_d = 1.0 / math.sqrt(head_size)

    # ---- hoisted invariants -------------------------------------------------
    # Fold the 1/sqrt(d) logit scale into q once; combine the two masks once.
    q = (q_ref[0].astype(f32) * inv_sqrt_d).astype(cdt)                # (tq, H)
    kpk = (k_ref[0].astype(f32) + pk_ref[0].astype(f32)).astype(cdt)   # (L, H)  K + abs_pos_K
    mask = (tmask_ref[0] != 0) | (amask_ref[...] != 0)                 # (tq, L)

    # Block-diagonal head-selector matrices, built directly from iotas
    # (no transposes anywhere).
    lane = jax.lax.broadcasted_iota(jnp.int32, (H, head_num), 0)
    head = jax.lax.broadcasted_iota(jnp.int32, (H, head_num), 1)
    seg = (lane // head_size == head).astype(cdt)                      # (H, hn)
    lane_t = jax.lax.broadcasted_iota(jnp.int32, (head_num, H), 1)
    head_t = jax.lax.broadcasted_iota(jnp.int32, (head_num, H), 0)
    seg_t = (lane_t // head_size == head_t).astype(cdt)                # (hn, H)

    # ---- logits: full-H elementwise + per-head segment reduction on the MXU -
    # logits[i,j,h] = sum_{d in head h} q[i,d] * (K+posK)[j,d] + tK[i,j,d] + dK[i,j,d])*q[i,d]
    kall = tk_ref[0].astype(cdt) + dk_ref[0].astype(cdt) + kpk[None, :, :]   # (tq,L,H)
    prod = (kall * q[:, None, :]).reshape(tq * L, H)
    logits = jax.lax.dot_general(
        prod, seg, dimension_numbers=(((1,), (0,)), ((), ())),
        preferred_element_type=f32,
    ).reshape(tq, L, head_num)

    # ---- mask + numerically stable softmax over the key axis ----------------
    logits = jnp.where(mask[:, :, None], NEG_INF, logits)
    m = jnp.max(logits, axis=1, keepdims=True)
    e = jnp.exp(logits - m)
    s = jnp.sum(e, axis=1, keepdims=True)
    p = e * pl.reciprocal(s, approx=True)                              # (tq, L, hn)
    # dropout: identity (inference)

    # ---- outputs: expand p back to H lanes (MXU) and fuse all V-side sums ---
    p_full = jax.lax.dot_general(
        p.reshape(tq * L, head_num).astype(cdt), seg_t,
        dimension_numbers=(((1,), (0,)), ((), ())),
        preferred_element_type=f32,
    ).astype(cdt).reshape(tq, L, H)
    vpv = (v_ref[0].astype(f32) + pv_ref[0].astype(f32)).astype(cdt)   # (L, H)  V + abs_pos_V
    vall = tv_ref[0].astype(cdt) + dv_ref[0].astype(cdt) + vpv[None, :, :]   # (tq,L,H)
    out = jnp.sum((p_full * vall).astype(f32), axis=1)                 # (tq, H), f32 accumulate
    o_ref[0] = out.astype(o_ref.dtype)


# --------------------------------------------------------------------------
# Full forward
# --------------------------------------------------------------------------
def time_aware_mha(
    queries, keys, time_mask, attn_mask,
    time_matrix_K, time_matrix_V, dis_matrix_K, dis_matrix_V,
    abs_pos_K, abs_pos_V, params, head_num, compute_dtype=None,
):
    B, L, H = queries.shape
    assert H % head_num == 0
    d = H // head_num
    cdt = jnp.float32 if compute_dtype is None else jnp.dtype(compute_dtype)
    vmem_limit = _pick_vmem_limit()

    # --- projections: Q alone; K and V fused (keys read from HBM once) ---
    Q = pallas_linear(
        queries.reshape(B * L, H), params["Qw_t"], params["Qb"], vmem_limit=vmem_limit
    ).reshape(B, L, H)
    KVw = jnp.concatenate([params["Kw_t"], params["Vw_t"]], axis=1)   # (H, 2H)
    KVb = jnp.concatenate([params["Kb"], params["Vb"]], axis=0)       # (2H,)
    KV = pallas_linear(
        keys.reshape(B * L, H), KVw, KVb, vmem_limit=vmem_limit
    ).reshape(B, L, 2 * H)
    K, V = KV[..., :H], KV[..., H:]

    # Relation tensors are streamed in their incoming dtype (f32, or bf16 if the
    # upstream producer emits bf16 at rest) — no host-side cast here.
    tmask = time_mask.astype(jnp.int32)[:, :, None]   # (B, L, 1)
    amask = attn_mask.astype(jnp.int32)               # (L, L)

    rel_itemsize = jnp.dtype(time_matrix_K.dtype).itemsize
    tile_q = _choose_q_tile(L, H, rel_itemsize, vmem_limit, B)
    grid = (B, L // tile_q)

    q_spec   = pl.BlockSpec((1, tile_q, H), lambda b, qi: (b, qi, 0))
    kv_spec  = pl.BlockSpec((1, L, H), lambda b, qi: (b, 0, 0))
    rel_spec = pl.BlockSpec((1, tile_q, L, H), lambda b, qi: (b, qi, 0, 0))
    tm_spec  = pl.BlockSpec((1, tile_q, 1), lambda b, qi: (b, qi, 0))
    am_spec  = pl.BlockSpec((tile_q, L), lambda b, qi: (qi, 0))
    out_spec = pl.BlockSpec((1, tile_q, H), lambda b, qi: (b, qi, 0))

    kernel = functools.partial(
        _time_attn_kernel, head_num=head_num, head_size=d, compute_dtype=cdt
    )

    return pl.pallas_call(
        kernel,
        out_shape=jax.ShapeDtypeStruct((B, L, H), jnp.float32),
        grid=grid,
        in_specs=[
            q_spec, kv_spec, kv_spec,                # Q, K, V
            kv_spec, kv_spec,                        # abs_pos_K, abs_pos_V
            rel_spec, rel_spec, rel_spec, rel_spec,  # time_K, time_V, dis_K, dis_V
            tm_spec, am_spec,                        # time_mask, attn_mask
        ],
        out_specs=out_spec,
        compiler_params=pltpu.CompilerParams(
            dimension_semantics=("parallel", "parallel"),
            vmem_limit_bytes=vmem_limit,
        ),
    )(Q, K, V, abs_pos_K, abs_pos_V,
      time_matrix_K, time_matrix_V, dis_matrix_K, dis_matrix_V,
      tmask, amask)


# --------------------------------------------------------------------------
# Pure-JAX reference (mirrors the PyTorch code exactly; used only for testing)
# --------------------------------------------------------------------------
def _split_heads_3d(x, head_num):          # (B, L, H) -> (head_num*B, L, d)
    B, L, H = x.shape
    d = H // head_num
    return x.reshape(B, L, head_num, d).transpose(2, 0, 1, 3).reshape(head_num * B, L, d)


def _split_heads_4d(x, head_num):          # (B, L, L, H) -> (head_num*B, L, L, d)
    B, L, L2, H = x.shape
    d = H // head_num
    return (
        x.reshape(B, L, L2, head_num, d)
        .transpose(3, 0, 1, 2, 4)
        .reshape(head_num * B, L, L2, d)
    )


def _merge_heads(x, head_num, B):          # (head_num*B, L, d) -> (B, L, H)
    _, L, d = x.shape
    return x.reshape(head_num, B, L, d).transpose(1, 2, 0, 3).reshape(B, L, head_num * d)


def ref_forward(
    queries, keys, time_mask, attn_mask,
    time_matrix_K, time_matrix_V, dis_matrix_K, dis_matrix_V,
    abs_pos_K, abs_pos_V, params, head_num,
):
    B, L, H = queries.shape
    d = H // head_num
    Q = queries @ params["Qw_t"] + params["Qb"]
    K = keys @ params["Kw_t"] + params["Kb"]
    V = keys @ params["Vw_t"] + params["Vb"]

    Q_ = _split_heads_3d(Q, head_num)
    K_ = _split_heads_3d(K, head_num)
    V_ = _split_heads_3d(V, head_num)
    pK_ = _split_heads_3d(abs_pos_K, head_num)
    pV_ = _split_heads_3d(abs_pos_V, head_num)
    tK_ = _split_heads_4d(time_matrix_K, head_num)
    tV_ = _split_heads_4d(time_matrix_V, head_num)
    dK_ = _split_heads_4d(dis_matrix_K, head_num)
    dV_ = _split_heads_4d(dis_matrix_V, head_num)

    attn = jnp.einsum("mid,mjd->mij", Q_, K_)
    attn += jnp.einsum("mid,mjd->mij", Q_, pK_)
    attn += jnp.einsum("mijd,mid->mij", tK_, Q_)
    attn += jnp.einsum("mijd,mid->mij", dK_, Q_)
    attn = attn / (float(d) ** 0.5)

    tm = jnp.tile(time_mask[:, :, None], (head_num, 1, 1))
    attn = jnp.where(tm, NEG_INF, attn)
    attn = jnp.where(attn_mask[None, :, :], NEG_INF, attn)
    p = jax.nn.softmax(attn, axis=-1)

    out = jnp.einsum("mij,mjd->mid", p, V_)
    out += jnp.einsum("mij,mjd->mid", p, pV_)
    out += jnp.einsum("mij,mijd->mid", p, tV_)
    out += jnp.einsum("mij,mijd->mid", p, dV_)
    return _merge_heads(out, head_num, B)


# --------------------------------------------------------------------------
if __name__ == "__main__":
    B, L, H, head_num = 2, 8, 32, 4

    key = jax.random.PRNGKey(0)
    ks = jax.random.split(key, 16)

    # PyTorch Linear computes y = x W^T + b; we store W^T directly as (in, out).
    params = {
        "Qw_t": jax.random.normal(ks[0], (H, H), jnp.float32) * 0.05,
        "Qb": jax.random.normal(ks[1], (H,), jnp.float32) * 0.05,
        "Kw_t": jax.random.normal(ks[2], (H, H), jnp.float32) * 0.05,
        "Kb": jax.random.normal(ks[3], (H,), jnp.float32) * 0.05,
        "Vw_t": jax.random.normal(ks[4], (H, H), jnp.float32) * 0.05,
        "Vb": jax.random.normal(ks[5], (H,), jnp.float32) * 0.05,
    }

    queries = jax.random.normal(ks[6], (B, L, H), jnp.float32)
    kv = jax.random.normal(ks[7], (B, L, H), jnp.float32)
    time_matrix_K = jax.random.normal(ks[8], (B, L, L, H), jnp.float32) * 0.1
    time_matrix_V = jax.random.normal(ks[9], (B, L, L, H), jnp.float32) * 0.1
    dis_matrix_K = jax.random.normal(ks[10], (B, L, L, H), jnp.float32) * 0.1
    dis_matrix_V = jax.random.normal(ks[11], (B, L, L, H), jnp.float32) * 0.1
    abs_pos_K = jax.random.normal(ks[12], (B, L, H), jnp.float32) * 0.1
    abs_pos_V = jax.random.normal(ks[13], (B, L, H), jnp.float32) * 0.1

    # masks: time_mask True where padded; attn_mask = strictly-upper (causal)
    time_mask = jax.random.bernoulli(ks[14], 0.25, (B, L))
    attn_mask = jnp.triu(jnp.ones((L, L), dtype=bool), k=1)

    args = (
        queries, kv, time_mask, attn_mask,
        time_matrix_K, time_matrix_V, dis_matrix_K, dis_matrix_V,
        abs_pos_K, abs_pos_V, params, head_num,
    )

    # --- f32 path (default; v5e-safe) ---
    out = jax.block_until_ready(time_aware_mha(*args))
    ref = jax.block_until_ready(ref_forward(*args))
    assert out.shape == (B, L, H), out.shape
    assert jnp.allclose(out, ref, atol=5e-3, rtol=5e-3), (
        float(jnp.max(jnp.abs(out - ref)))
    )

    # --- bf16-at-rest relations + bf16 in-kernel elementwise (v6e/v7x path) ---
    # In production the upstream embedding producer emits these tensors in bf16
    # natively (no wrapper-side cast); here we just construct bf16 example inputs.
    rel_bf16 = tuple(
        t.astype(jnp.bfloat16)
        for t in (time_matrix_K, time_matrix_V, dis_matrix_K, dis_matrix_V)
    )
    out_bf16 = jax.block_until_ready(
        time_aware_mha(
            queries, kv, time_mask, attn_mask, *rel_bf16,
            abs_pos_K, abs_pos_V, params, head_num,
            compute_dtype=jnp.bfloat16,
        )
    )
    assert out_bf16.shape == (B, L, H)
    assert jnp.allclose(out_bf16, ref, atol=5e-2, rtol=5e-2), (
        float(jnp.max(jnp.abs(out_bf16 - ref)))
    )

    print("KERNEL_OK")
</pallas_src>

<mosaic_0001>
module attributes {stable_mosaic.version = 11 : i64} {
  func.func @_linear_kernel(%arg0: i32, %arg1: memref<16x32xf32, #tpu.memory_space<vmem>>, %arg2: memref<32x32xf32, #tpu.memory_space<vmem>>, %arg3: memref<1x32xf32, #tpu.memory_space<vmem>>, %arg4: memref<16x32xf32, #tpu.memory_space<vmem>>) attributes {dimension_semantics = [#tpu.dimension_semantics<parallel>], iteration_bounds = array<i64: 1>, scalar_prefetch = 0 : i64, scratch_operands = 0 : i64, tpu.core_type = #tpu.core_type<tc>, window_params = [{transform_indices = @transform_0, window_bounds = array<i64: 16, 32>}, {pipeline_mode = #tpu.pipeline_mode<synchronous>, transform_indices = @transform_1, window_bounds = array<i64: 32, 32>}, {pipeline_mode = #tpu.pipeline_mode<synchronous>, transform_indices = @transform_2, window_bounds = array<i64: 1, 32>}, {transform_indices = @transform_3, window_bounds = array<i64: 16, 32>}]} {
    %c0 = arith.constant 0 : index
    %c0_0 = arith.constant 0 : index
    %0 = vector.load %arg1[%c0, %c0_0] : memref<16x32xf32, #tpu.memory_space<vmem>>, vector<16x32xf32>
    %c0_1 = arith.constant 0 : index
    %c0_2 = arith.constant 0 : index
    %1 = vector.load %arg2[%c0_1, %c0_2] : memref<32x32xf32, #tpu.memory_space<vmem>>, vector<32x32xf32>
    %c0_3 = arith.constant 0 : index
    %c0_4 = arith.constant 0 : index
    %2 = vector.load %arg3[%c0_3, %c0_4] : memref<1x32xf32, #tpu.memory_space<vmem>>, vector<1x32xf32>
    %cst = arith.constant dense<0.000000e+00> : vector<16x32xf32>
    %3 = tpu.matmul %0, %1, %cst {dimension_numbers = #tpu.dot_dimension_numbers<[1], [0], [0], [1], [0, 0, 1, 1], [], []>} : vector<16x32xf32>, vector<32x32xf32>, vector<16x32xf32> -> vector<16x32xf32>
    %4 = vector.broadcast %2 : vector<1x32xf32> to vector<16x32xf32>
    %5 = arith.addf %3, %4 : vector<16x32xf32>
    %c0_5 = arith.constant 0 : index
    %c0_6 = arith.constant 0 : index
    %6 = vector.load %arg4[%c0_5, %c0_6] : memref<16x32xf32, #tpu.memory_space<vmem>>, vector<16x32xf32>
    tpu.vector_store %arg4[%c0_5, %c0_6], %5 {strides = array<i32>} : memref<16x32xf32, #tpu.memory_space<vmem>>, vector<16x32xf32>,
    return
  }
  func.func @transform_0(%arg0: i32) -> (i32, i32) {
    %c0_i32 = arith.constant 0 : i32
    %c0_i32_0 = arith.constant 0 : i32
    return %arg0, %c0_i32 : i32, i32
  }
  func.func @transform_1(%arg0: i32) -> (i32, i32) {
    %c0_i32 = arith.constant 0 : i32
    %c0_i32_0 = arith.constant 0 : i32
    %c0_i32_1 = arith.constant 0 : i32
    return %c0_i32, %c0_i32_0 : i32, i32
  }
  func.func @transform_2(%arg0: i32) -> (i32, i32) {
    %c0_i32 = arith.constant 0 : i32
    %c0_i32_0 = arith.constant 0 : i32
    %c0_i32_1 = arith.constant 0 : i32
    return %c0_i32, %c0_i32_0 : i32, i32
  }
  func.func @transform_3(%arg0: i32) -> (i32, i32) {
    %c0_i32 = arith.constant 0 : i32
    %c0_i32_0 = arith.constant 0 : i32
    return %arg0, %c0_i32 : i32, i32
  }
}

</mosaic_0001>

<bundles_post_ra>
// kernel: tpu_custom_call.1
= control target key start
LH: loop header
LB: loop body
LE: loop exit
PB: predicated region body
PF: predicated region fallthrough
CT: control target
= control target key end

     0   :  { %8 = vsyncpa [#allocation3], 0  ;;  %s249_s0 = inlined_call_operand.hbm [shape: f32[16,32], index: 0, kind: input, shape index: {}]   ;;  %s250_s1 = inlined_call_operand.hbm [shape: f32[32,32], index: 1, kind: input, shape index: {}]   ;;  %s251_s2 = inlined_call_operand.vmem [shape: f32[1,32], index: 2, kind: input, shape index: {}]   ;;  %s252_s3 = inlined_call_operand.hbm [shape: f32[16,32], index: 3, kind: output, shape index: {}]  }
   0x1   :  { %9 = vsyncpa [#allocation6], 0 }
   0x2   :  { %10 = vsyncpa [#allocation4], 0  ;;  %s15_s14 = sshll.u32 %s249_s0, 4  ;;  %s199_s15 = smov [#allocation2]   ;;  %s16_s14 = int_to_ptr.hbm [resolvable:$true] %s15_s14 }
   0x3   :  { %s17_s16 = sshll.u32 %s199_s15, 4  ;;  %s28_s19 = sshll.u32 %s250_s1, 4  ;;  %s18_s16 = int_to_ptr.vmem [resolvable:$true] %s17_s16  ;;  %s29_s19 = int_to_ptr.hbm [resolvable:$true] %s28_s19 }
   0x4   :  { %s200_s20 = smov 128   ;;  %s201_s21 = smov 8  }
   0x5   :  { %23 = dma.hbm_to_vmem [thread:$0]  %s16_s14, 256, %s18_s16, [#allocation3], %s200_s20, %s200_s20, %s201_s21  }
   0x6   :  { %s202_s22 = smov [#allocation5]  }
   0x7   :  { %s30_s23 = sshll.u32 %s202_s22, 4  ;;  %s31_s23 = int_to_ptr.vmem [resolvable:$true] %s30_s23 }
   0x8   :  { %36 = dma.hbm_to_vmem [thread:$0]  %s29_s19, 512, %s31_s23, [#allocation6], %s200_s20, %s200_s20, %s201_s21  }
   0x9   :  { %193 = dma.done.wait [#allocation3], 256  }
   0xa   :  { %194 = vsyncadd [#allocation3], 4294967040 }
   0xb   :  { %195 = dma.done.wait [#allocation6], 512  }
   0xc   :  { %196 = vsyncadd [#allocation6], 4294966784  ;;  %v52_v0 = vld [vmem:[#allocation5 + $0x18] sm:$0xff]  ;;  %v51_v1 = vld [vmem:[#allocation5 + $0x10] sm:$0xff]  ;;  %vm57_vm0 = vcmask 261120   ;;  %s203_s24 = smov [#allocation7]  }
   0xd   :  { %76 = vmatpush.msra.mxu0 %v52_v0  ;;  %111 = vmatpush.msra.mxu1 %v52_v0  ;;  %v50_v2 = vld [vmem:[#allocation5 + $0x8] sm:$0xff]  ;;  %v49_v3 = vld [vmem:[#allocation5] sm:$0xff]  ;;  %v47_v4 = vld [vmem:[#allocation2] sm:$0xff]  ;;  %s93_s25 = sshll.u32 %s203_s24, 4  ;;  %s95_s28 = sshll.u32 %s252_s3, 4  ;;  %s94_s25 = int_to_ptr.vmem [resolvable:$true] %s93_s25  ;;  %s96_s28 = int_to_ptr.hbm [resolvable:$true] %s95_s28 }
   0xe   :  { %v48_v5 = vld [vmem:[#allocation2 + $0x8] sm:$0xff]  ;;  %v120_v6 = vld [vmem:[%s251_s2] ss:$0 sm:$0xff] }
   0xf   :  { %77 = vmatpush.msra.mxu0 %v51_v1  ;;  %112 = vmatpush.msra.mxu1 %v51_v1 }
  0x11   :  { %78 = vmatpush.msra.mxu0 %v50_v2  ;;  %113 = vmatpush.msra.mxu1 %v50_v2 }
  0x13   :  { %79 = vmatpush.msra.mxu0 %v49_v3  ;;  %114 = vmatpush.msra.mxu1 %v49_v3 }
  0x14   :  { %109 = vmatmul.msk.f32.vlgmr.msra.gmra.mxu0 %vm57_vm0, %v47_v4  ;;  %110 = vmatmul.msk.f32.vlgmr.msra.gmra.mxu1 %vm57_vm0, %v48_v5 }
  0x91   :  { %v81_v7 = vpop.f32.mrf.mxu0  ;;  %v84_v8 = vpop.f32.mrf.mxu1 }
  0x92   :  { %v82_v9 = vadd.f32 %v120_v6, %v81_v7  ;;  %v85_v10 = vadd.f32 %v120_v6, %v84_v8 }
  0x94   :  { %87 = vst.msk [vmem:[#allocation7] sm:$0xff] %vm57_vm0, %v82_v9 }
  0x95   :  { %88 = vst.msk [vmem:[#allocation7 + $0x8] sm:$0xff] %vm57_vm0, %v85_v10 }
  0x96   :  { %101 = dma.vmem_to_hbm [thread:$0]  %s94_s25, 256, %s96_s28, [#allocation4], %s200_s20, %s200_s20, %s201_s21  }
  0x97   :  { %197 = dma.done.wait [#allocation4], 256  }
  0x98   :  { %198 = vsyncadd [#allocation4], 4294967040 }
  0x99   :  { %106 = vsyncpa [#allocation3], 1 }
  0x9a   :  { %107 = vsyncpa [#allocation6], 1 }
  0x9b   :  { %108 = vsyncpa [#allocation4], 1 }

</bundles_post_ra>
